<compile_context>
chip_gen: v7x
topology: tpu7x:2x2x1
jax: 0.10.0
libtpu: 0.0.40
codegen_flags: <defaults>
</compile_context>

<pallas_src>
import functools
import math

import jax
import jax.numpy as jnp
from jax.experimental import pallas as pl
from jax.experimental.pallas import tpu as pltpu

_HALF_LOG_2PI = 0.5 * math.log(2.0 * math.pi)
_PACK = 128  # packed output lane width (one full vreg lane extent)


# --------------------------------------------------------------------------- #
# Kernel
# --------------------------------------------------------------------------- #
def actor_kernel(state_ref, w01_ref, b01_ref, w2_ref, b2_ref,
                 std_ref, eps_ref, const_ref, out_ref, *, a):
    """One batch tile. Output is a packed (tb, 128) slab:
       lanes [0:a)      -> mean
       lanes [a:2a)     -> action = mean + std * eps
       lane  2a         -> log_prob
       remaining lanes  -> 0
    """
    # ---- fused L0∘L1 (single MXU matmul) + ReLU ----
    h = jnp.dot(state_ref[...], w01_ref[...],
                preferred_element_type=jnp.float32) + b01_ref[...]
    h = jnp.maximum(h, 0.0)

    # ---- packed head: W2 duplicated into lanes 0:a and a:2a, zero elsewhere.
    # tanh(0)=0, so padded lanes stay zero. One lane-dense MXU result.
    z = jnp.dot(h.astype(w2_ref.dtype), w2_ref[...],
                preferred_element_type=jnp.float32) + b2_ref[...]
    mean2 = jnp.tanh(z)                                   # (tb, 128)

    # ---- action lanes: std_shift/eps_shift are nonzero only in lanes a:2a,
    # so this adds std*eps exactly where the duplicated mean sits.
    eps = eps_ref[...]                                    # (tb, 128), f32
    packed = mean2 + std_ref[...] * eps

    # ---- log_prob: (action-mean)/std == eps by construction.
    # const = sum(log std) + a * 0.5*log(2*pi), precomputed in the wrapper.
    logp = (-0.5 * jnp.sum(eps * eps, axis=-1, keepdims=True)
            - const_ref[...])                             # (tb, 1)
    lane = jax.lax.broadcasted_iota(jnp.int32, packed.shape, 1)
    out_ref[...] = packed + jnp.where(lane == 2 * a, logp, 0.0)


# --------------------------------------------------------------------------- #
# Wrapper
# --------------------------------------------------------------------------- #
def _round_up(x, m):
    return ((x + m - 1) // m) * m


def _pick_batch_tile(B, max_tb=1024):
    """Multiple-of-8 batch tile; >=2 grid steps when B>=16 (v7x megacore)."""
    if B < 16:
        return _round_up(max(B, 1), 8)
    return min(max_tb, _round_up((B + 1) // 2, 8))


def precompute_actor(params, *, matmul_dtype=jnp.float32):
    """Batch-independent precompute. Cache this per parameter update.

    matmul_dtype=jnp.bfloat16 is recommended on v6e/v7x (relax tolerances to
    ~1e-2); all elementwise / log-prob math stays f32 either way.
    """
    w0, b0, w1, b1, w2, b2, std_p = params
    S, H1 = w0.shape
    H2 = w1.shape[1]
    A = w2.shape[1]
    assert 2 * A + 1 <= _PACK, "packed-output layout needs 2*A+1 <= 128"
    # TODO(synk): generalize to hidden_size tuples of length != 2 (extra
    # activ(L_i(x)) middle layers would need an in-kernel loop).

    hp = jax.lax.Precision.HIGHEST
    # Fuse L0 into L1: no activation between them in the reference forward.
    w01 = jnp.dot(w0, w1, precision=hp).astype(matmul_dtype)          # (S, H2)
    b01 = (jnp.dot(b0, w1, precision=hp) + b1).reshape(1, H2)         # (1, H2)

    # W2/b2 duplicated into lanes 0:A (mean) and A:2A (action), zero-padded.
    w2big = (jnp.zeros((H2, _PACK), jnp.float32)
             .at[:, :A].set(w2)
             .at[:, A:2 * A].set(w2)).astype(matmul_dtype)            # (H2,128)
    b2big = (jnp.zeros((1, _PACK), jnp.float32)
             .at[0, :A].set(b2)
             .at[0, A:2 * A].set(b2))                                 # (1,128)

    std = jax.nn.softplus(std_p)                                      # (A,)
    std_shift = jnp.zeros((1, _PACK), jnp.float32).at[0, A:2 * A].set(std)
    logp_const = (jnp.sum(jnp.log(std)) + A * _HALF_LOG_2PI).reshape(1, 1)
    ent_scalar = jnp.sum(0.5 + _HALF_LOG_2PI + jnp.log(std))          # scalar

    return dict(w01=w01, b01=b01, w2big=w2big, b2big=b2big,
                std_shift=std_shift, logp_const=logp_const, ent=ent_scalar)


def actor_forward(state, prepared, eps, *, tb=None):
    """Actor forward. Returns (mean, action, log_prob, entropy)."""
    B, S = state.shape
    A = eps.shape[1]
    w01, b01 = prepared["w01"], prepared["b01"]
    w2big, b2big = prepared["w2big"], prepared["b2big"]
    std_shift, logp_const = prepared["std_shift"], prepared["logp_const"]
    H2 = w01.shape[1]

    if tb is None:
        tb = _pick_batch_tile(B)
    Bp = _round_up(B, tb)
    grid = Bp // tb

    # Pad batch (masked-tail-free: padded rows are valid math, sliced off).
    state_c = state.astype(w01.dtype)
    if Bp != B:
        state_c = jnp.pad(state_c, ((0, Bp - B), (0, 0)))
    # eps placed directly into action lanes A:2A of a lane-dense f32 input
    # (log-prob math must stay f32 even when matmuls run in bf16).
    eps_shift = jnp.zeros((Bp, _PACK), jnp.float32).at[:B, A:2 * A].set(eps)

    itm = lambda x: x.size * x.dtype.itemsize
    cost = pl.CostEstimate(
        flops=2 * Bp * (S * H2 + H2 * _PACK),
        transcendentals=Bp * _PACK,
        bytes_accessed=(itm(state_c) + itm(eps_shift) + Bp * _PACK * 4
                        + itm(w01) + itm(b01) + itm(w2big) + itm(b2big)
                        + itm(std_shift) + itm(logp_const)),
    )

    full = lambda shape: pl.BlockSpec(shape, lambda i: (0, 0))

    packed = pl.pallas_call(
        functools.partial(actor_kernel, a=A),
        out_shape=jax.ShapeDtypeStruct((Bp, _PACK), jnp.float32),
        grid=(grid,),
        in_specs=[
            pl.BlockSpec((tb, S), lambda i: (i, 0)),      # state (batch-tiled)
            full((S, H2)), full((1, H2)),                 # fused layer 0+1
            full((H2, _PACK)), full((1, _PACK)),          # packed layer 2
            full((1, _PACK)),                             # std (shifted lanes)
            pl.BlockSpec((tb, _PACK), lambda i: (i, 0)),  # eps (shifted lanes)
            full((1, 1)),                                 # log-prob constant
        ],
        out_specs=pl.BlockSpec((tb, _PACK), lambda i: (i, 0)),
        compiler_params=pltpu.CompilerParams(
            dimension_semantics=("parallel",),
            vmem_limit_bytes=32 * 1024 * 1024),           # safe on v5e/v6e/v7x
        cost_estimate=cost,
    )(state_c, w01, b01, w2big, b2big, std_shift, eps_shift, logp_const)

    mean = packed[:B, :A]
    action = packed[:B, A:2 * A]
    log_prob = packed[:B, 2 * A:2 * A + 1]
    entropy = jnp.broadcast_to(prepared["ent"].reshape(1, 1), (B, 1))
    return mean, action, log_prob, entropy


# --------------------------------------------------------------------------- #
# Init + pure-JAX reference
# --------------------------------------------------------------------------- #
def init_params(key, state_size, hidden_size, action_size, std=1.0):
    """Deterministic init mimicking nn.Linear default (U[-1/sqrt(fan_in), ...])."""
    dims = (state_size,) + tuple(hidden_size) + (action_size,)
    params = []
    for d_in, d_out in zip(dims[:-1], dims[1:]):
        key, kw, kb = jax.random.split(key, 3)
        bound = 1.0 / jnp.sqrt(jnp.float32(d_in))
        w = jax.random.uniform(kw, (d_in, d_out), jnp.float32, -bound, bound)
        b = jax.random.uniform(kb, (d_out,), jnp.float32, -bound, bound)
        params += [w, b]
    params.append(jnp.ones((action_size,), jnp.float32) * std)
    return tuple(params)


def actor_reference(state, params, eps):
    """Pure-JAX reference (unfused, matches the PyTorch forward structure)."""
    w0, b0, w1, b1, w2, b2, std_p = params
    x = state @ w0 + b0                      # no activation (matches reference)
    x = jnp.maximum(x @ w1 + b1, 0.0)        # activ = ReLU
    mean = jnp.tanh(x @ w2 + b2)
    std = jax.nn.softplus(std_p)
    action = mean + std * eps
    logp = (-0.5 * ((action - mean) / std) ** 2 - jnp.log(std) - _HALF_LOG_2PI)
    logp = jnp.sum(logp, axis=-1, keepdims=True)
    ent = jnp.broadcast_to(0.5 + _HALF_LOG_2PI + jnp.log(std), mean.shape)
    ent = jnp.sum(ent, axis=-1, keepdims=True)
    return mean, action, logp, ent


# --------------------------------------------------------------------------- #
# Demo
# --------------------------------------------------------------------------- #
if __name__ == "__main__":
    import numpy as np

    STATE, HIDDEN, ACTION = 32, (64, 64), 8
    BATCH = 16   # tb=8 -> 2 grid steps (both v7x TensorCores usable)

    key = jax.random.PRNGKey(0)
    k_params, k_state, k_eps = jax.random.split(key, 3)

    params = init_params(k_params, STATE, HIDDEN, ACTION, std=1.0)
    state = jax.random.normal(k_state, (BATCH, STATE), jnp.float32)
    # Normal(mean, std).sample() via reparameterization; noise drawn in glue.
    eps = jax.random.normal(k_eps, (BATCH, ACTION), jnp.float32)

    # Batch-independent precompute: run once per parameter update, reuse.
    prepared = precompute_actor(params, matmul_dtype=jnp.float32)

    mean, action, log_prob, entropy = jax.block_until_ready(
        actor_forward(state, prepared, eps))

    ref = actor_reference(state, params, eps)
    # Tolerance accounts for the (numerically benign) L0/L1 fusion reordering.
    for got, want in zip((mean, action, log_prob, entropy), ref):
        np.testing.assert_allclose(np.asarray(got), np.asarray(want),
                                   rtol=1e-4, atol=1e-4)

    assert mean.shape == (BATCH, ACTION)
    assert action.shape == (BATCH, ACTION)
    assert log_prob.shape == (BATCH, 1)
    assert entropy.shape == (BATCH, 1)

    print("KERNEL_OK")
</pallas_src>

<mosaic_0001>
module attributes {stable_mosaic.version = 11 : i64} {
  func.func @actor_kernel(%arg0: i32, %arg1: memref<8x32xf32, #tpu.memory_space<vmem>>, %arg2: memref<32x64xf32, #tpu.memory_space<vmem>>, %arg3: memref<1x64xf32, #tpu.memory_space<vmem>>, %arg4: memref<64x128xf32, #tpu.memory_space<vmem>>, %arg5: memref<1x128xf32, #tpu.memory_space<vmem>>, %arg6: memref<1x128xf32, #tpu.memory_space<vmem>>, %arg7: memref<8x128xf32, #tpu.memory_space<vmem>>, %arg8: memref<1x1xf32, #tpu.memory_space<vmem>>, %arg9: memref<8x128xf32, #tpu.memory_space<vmem>>) attributes {dimension_semantics = [#tpu.dimension_semantics<parallel>], iteration_bounds = array<i64: 2>, scalar_prefetch = 0 : i64, scratch_operands = 0 : i64, tpu.core_type = #tpu.core_type<tc>, window_params = [{transform_indices = @transform_0, window_bounds = array<i64: 8, 32>}, {pipeline_mode = #tpu.pipeline_mode<synchronous>, transform_indices = @transform_1, window_bounds = array<i64: 32, 64>}, {pipeline_mode = #tpu.pipeline_mode<synchronous>, transform_indices = @transform_2, window_bounds = array<i64: 1, 64>}, {pipeline_mode = #tpu.pipeline_mode<synchronous>, transform_indices = @transform_3, window_bounds = array<i64: 64, 128>}, {pipeline_mode = #tpu.pipeline_mode<synchronous>, transform_indices = @transform_4, window_bounds = array<i64: 1, 128>}, {pipeline_mode = #tpu.pipeline_mode<synchronous>, transform_indices = @transform_5, window_bounds = array<i64: 1, 128>}, {transform_indices = @transform_6, window_bounds = array<i64: 8, 128>}, {pipeline_mode = #tpu.pipeline_mode<synchronous>, transform_indices = @transform_7, window_bounds = array<i64: 1, 1>}, {transform_indices = @transform_8, window_bounds = array<i64: 8, 128>}]} {
    %c0 = arith.constant 0 : index
    %c0_0 = arith.constant 0 : index
    %0 = vector.load %arg1[%c0, %c0_0] : memref<8x32xf32, #tpu.memory_space<vmem>>, vector<8x32xf32>
    %c0_1 = arith.constant 0 : index
    %c0_2 = arith.constant 0 : index
    %1 = vector.load %arg2[%c0_1, %c0_2] : memref<32x64xf32, #tpu.memory_space<vmem>>, vector<32x64xf32>
    %cst = arith.constant dense<0.000000e+00> : vector<8x64xf32>
    %2 = tpu.matmul %0, %1, %cst {dimension_numbers = #tpu.dot_dimension_numbers<[1], [0], [0], [1], [0, 0, 1, 1], [], []>} : vector<8x32xf32>, vector<32x64xf32>, vector<8x64xf32> -> vector<8x64xf32>
    %c0_3 = arith.constant 0 : index
    %c0_4 = arith.constant 0 : index
    %3 = vector.load %arg3[%c0_3, %c0_4] : memref<1x64xf32, #tpu.memory_space<vmem>>, vector<1x64xf32>
    %4 = vector.broadcast %3 : vector<1x64xf32> to vector<8x64xf32>
    %5 = arith.addf %2, %4 : vector<8x64xf32>
    %cst_5 = arith.constant 0.000000e+00 : f32
    %6 = vector.broadcast %cst_5 : f32 to vector<8x64xf32>
    %7 = arith.maximumf %5, %6 : vector<8x64xf32>
    %c0_6 = arith.constant 0 : index
    %c0_7 = arith.constant 0 : index
    %8 = vector.load %arg4[%c0_6, %c0_7] : memref<64x128xf32, #tpu.memory_space<vmem>>, vector<64x128xf32>
    %cst_8 = arith.constant dense<0.000000e+00> : vector<8x128xf32>
    %9 = tpu.matmul %7, %8, %cst_8 {dimension_numbers = #tpu.dot_dimension_numbers<[1], [0], [0], [1], [0, 0, 1, 1], [], []>} : vector<8x64xf32>, vector<64x128xf32>, vector<8x128xf32> -> vector<8x128xf32>
    %c0_9 = arith.constant 0 : index
    %c0_10 = arith.constant 0 : index
    %10 = vector.load %arg5[%c0_9, %c0_10] : memref<1x128xf32, #tpu.memory_space<vmem>>, vector<1x128xf32>
    %11 = vector.broadcast %10 : vector<1x128xf32> to vector<8x128xf32>
    %12 = arith.addf %9, %11 : vector<8x128xf32>
    %13 = math.tanh %12 : vector<8x128xf32>
    %c0_11 = arith.constant 0 : index
    %c0_12 = arith.constant 0 : index
    %14 = vector.load %arg7[%c0_11, %c0_12] : memref<8x128xf32, #tpu.memory_space<vmem>>, vector<8x128xf32>
    %c0_13 = arith.constant 0 : index
    %c0_14 = arith.constant 0 : index
    %15 = vector.load %arg6[%c0_13, %c0_14] : memref<1x128xf32, #tpu.memory_space<vmem>>, vector<1x128xf32>
    %16 = vector.broadcast %15 : vector<1x128xf32> to vector<8x128xf32>
    %17 = arith.mulf %16, %14 : vector<8x128xf32>
    %18 = arith.addf %13, %17 : vector<8x128xf32>
    %19 = arith.mulf %14, %14 : vector<8x128xf32>
    %cst_15 = arith.constant dense<0.000000e+00> : vector<8xf32>
    %20 = vector.multi_reduction <add>, %19, %cst_15 [1] : vector<8x128xf32> to vector<8xf32>
    %21 = vector.shape_cast %20 : vector<8xf32> to vector<8x1xf32>
    %cst_16 = arith.constant -5.000000e-01 : f32
    %22 = vector.broadcast %cst_16 : f32 to vector<8x1xf32>
    %23 = arith.mulf %22, %21 : vector<8x1xf32>
    %c0_17 = arith.constant 0 : index
    %c0_18 = arith.constant 0 : index
    %24 = vector.load %arg8[%c0_17, %c0_18] : memref<1x1xf32, #tpu.memory_space<vmem>>, vector<1x1xf32>
    %25 = vector.broadcast %24 : vector<1x1xf32> to vector<8x1xf32>
    %26 = arith.subf %23, %25 : vector<8x1xf32>
    %27 = tpu.iota {dimensions = array<i32: 1>} : vector<8x128xi32>
    %c16_i32 = arith.constant 16 : i32
    %28 = vector.broadcast %c16_i32 : i32 to vector<8x128xi32>
    %29 = arith.cmpi eq, %27, %28 : vector<8x128xi32>
    %cst_19 = arith.constant 0.000000e+00 : f32
    %30 = vector.shape_cast %26 : vector<8x1xf32> to vector<8x1xf32>
    %31 = vector.broadcast %30 : vector<8x1xf32> to vector<8x128xf32>
    %32 = vector.broadcast %cst_19 : f32 to vector<8x128xf32>
    %33 = arith.select %29, %31, %32 : vector<8x128xi1>, vector<8x128xf32>
    %34 = arith.addf %18, %33 : vector<8x128xf32>
    %c0_20 = arith.constant 0 : index
    %c0_21 = arith.constant 0 : index
    %35 = vector.load %arg9[%c0_20, %c0_21] : memref<8x128xf32, #tpu.memory_space<vmem>>, vector<8x128xf32>
    tpu.vector_store %arg9[%c0_20, %c0_21], %34 {strides = array<i32>} : memref<8x128xf32, #tpu.memory_space<vmem>>, vector<8x128xf32>,
    return
  }
  func.func @transform_0(%arg0: i32) -> (i32, i32) {
    %c0_i32 = arith.constant 0 : i32
    %c0_i32_0 = arith.constant 0 : i32
    return %arg0, %c0_i32 : i32, i32
  }
  func.func @transform_1(%arg0: i32) -> (i32, i32) {
    %c0_i32 = arith.constant 0 : i32
    %c0_i32_0 = arith.constant 0 : i32
    %c0_i32_1 = arith.constant 0 : i32
    return %c0_i32, %c0_i32_0 : i32, i32
  }
  func.func @transform_2(%arg0: i32) -> (i32, i32) {
    %c0_i32 = arith.constant 0 : i32
    %c0_i32_0 = arith.constant 0 : i32
    %c0_i32_1 = arith.constant 0 : i32
    return %c0_i32, %c0_i32_0 : i32, i32
  }
  func.func @transform_3(%arg0: i32) -> (i32, i32) {
    %c0_i32 = arith.constant 0 : i32
    %c0_i32_0 = arith.constant 0 : i32
    %c0_i32_1 = arith.constant 0 : i32
    return %c0_i32, %c0_i32_0 : i32, i32
  }
  func.func @transform_4(%arg0: i32) -> (i32, i32) {
    %c0_i32 = arith.constant 0 : i32
    %c0_i32_0 = arith.constant 0 : i32
    %c0_i32_1 = arith.constant 0 : i32
    return %c0_i32, %c0_i32_0 : i32, i32
  }
  func.func @transform_5(%arg0: i32) -> (i32, i32) {
    %c0_i32 = arith.constant 0 : i32
    %c0_i32_0 = arith.constant 0 : i32
    %c0_i32_1 = arith.constant 0 : i32
    return %c0_i32, %c0_i32_0 : i32, i32
  }
  func.func @transform_6(%arg0: i32) -> (i32, i32) {
    %c0_i32 = arith.constant 0 : i32
    %c0_i32_0 = arith.constant 0 : i32
    return %arg0, %c0_i32 : i32, i32
  }
  func.func @transform_7(%arg0: i32) -> (i32, i32) {
    %c0_i32 = arith.constant 0 : i32
    %c0_i32_0 = arith.constant 0 : i32
    %c0_i32_1 = arith.constant 0 : i32
    return %c0_i32, %c0_i32_0 : i32, i32
  }
  func.func @transform_8(%arg0: i32) -> (i32, i32) {
    %c0_i32 = arith.constant 0 : i32
    %c0_i32_0 = arith.constant 0 : i32
    return %arg0, %c0_i32 : i32, i32
  }
}

</mosaic_0001>

<bundles_post_ra>
// kernel: tpu_custom_call.1
= control target key start
LH: loop header
LB: loop body
LE: loop exit
PB: predicated region body
PF: predicated region fallthrough
CT: control target
= control target key end

     0   :  { %s1321_s0 = inlined_call_operand.hbm [shape: f32[16,32], index: 0, kind: input, shape index: {}]   ;;  %s1322_s1 = inlined_call_operand.hbm [shape: f32[32,64], index: 1, kind: input, shape index: {}]   ;;  %s1323_s2 = inlined_call_operand.vmem [shape: f32[1,64], index: 2, kind: input, shape index: {}]   ;;  %s1324_s3 = inlined_call_operand.hbm [shape: f32[64,128], index: 3, kind: input, shape index: {}]   ;;  %s1325_s4 = inlined_call_operand.vmem [shape: f32[1,128], index: 4, kind: input, shape index: {}]   ;;  %s1326_s5 = inlined_call_operand.vmem [shape: f32[1,128], index: 5, kind: input, shape index: {}]   ;;  %s1327_s6 = inlined_call_operand.vmem [shape: f32[16,128], index: 6, kind: input, shape index: {}]   ;;  %s1328_s7 = inlined_call_operand.<no memory space> [shape: f32[1,1], index: 7, kind: input, shape index: {}]   ;;  %s1329_s8 = inlined_call_operand.hbm [shape: f32[16,128], index: 8, kind: output, shape index: {}]  }
   0x1   :  { %v13_v0 = vstv %s1328_s7 }
   0x2   :  { %14 = vst [vmem:[#allocation2] sm:$0x1] %v13_v0 }
   0x3   :  { %15 = vsyncpa [#allocation4], 0 }
   0x4   :  { %17 = vsyncpa [#allocation4 + $0x1], 0 }
   0x5   :  { %18 = vsyncpa [#allocation7], 0 }
   0x6   :  { %19 = vsyncpa [#allocation5], 0 }
   0x7   :  { %21 = vsyncpa [#allocation5 + $0x1], 0  ;;  %s1071_s29 = smov 0   ;;  %s1073_s30 = smov 0  }
   0x8   :  { %s1075_s9 = smov 0   ;;  %s1077_s10 = smov 0  }
   0x9 LB: > { %s1092_s7 = sadd.s32 4294967295, %s1011_s10   ;;  %s694_s11 = sadd.s32 4294967294, %s1011_s10   ;;  %s1011_s10 = sphi %s1077_s10, %s1349_s10   ;;  %s1007_s9 = sphi %s1075_s9, %s1348_s9   ;;  %s1003_s30 = sphi %s1073_s30, %s1347_s30   ;;  %s999_s29 = sphi %s1071_s29, %s1346_s29  }
   0xa   : > { %p47_p0 = scmp.ne.s32.totalorder %s1003_s30, %s999_s29  ;;  %p1330_p1 = scmp.eq.s32.totalorder %s1092_s7, 0 }
   0xb   : > { %p229_p3 = scmp.eq.s32.totalorder %s694_s11, 1  ;;  %p695_p5 = scmp.ge.s32.totalorder %s1011_s10, 1 }
   0xc   : > { %p1101_p4 = por %p1330_p1, %p47_p0  ;;  %p236_p7 = scmp.lt.s32.totalorder %s1011_s10, 3 }
   0xd   : > { %p1106_p6 = por %p229_p3, %p47_p0  ;;  %s1013_s15 = smov [#allocation6]  }
   0xe   : > { %s1333_s12 = scalar_select %p1101_p4, 1, 0 }
   0xf   : > { %s1334_s13 = scalar_select %p1106_p6, 1, 0 }
  0x10   : > { %p1111_p8 = pnand %p695_p5, %p236_p7  ;;  %s248_s16 = sshll.u32 %s1013_s15, 4  ;;  %s1115_s16 = int_to_ptr.vmem [resolvable:$true] %s248_s16 }
  0x11   : > { %s1014_s18 = smov [#allocation8]   ;;  %s855_s22 = scalar_lea.hbm %s1322_s1, 512 }
  0x12   : > { %p791_p9 = pneg %p1111_p8  ;;  %s264_s19 = sshll.u32 %s1014_s18, 4  ;;  %s1126_s19 = int_to_ptr.vmem [resolvable:$true] %s264_s19 }
  0x13   : > { %p856_p12 = scmp.ne.s32.totalorder %s1322_s1, %s855_s22  ;;  %p862_p5 = scmp.lt.u32.totalorder %s855_s22, %s1322_s1 }
  0x14   : > { %p1122_p11 = pnand %p791_p9, %p1330_p1 }
  0x16   : > { %p857_p13 = pneg %p1122_p11 }
  0x18   : > { %p858_p0 = pnand %p857_p13, %p856_p12 }
  0x1a   : > { %p859_p3 = pneg %p858_p0 }
  0x1c   : > { %p864_p7 = pnand %p862_p5, %p859_p3 }
  0x1e   : > { %867 = shalt.err (!%p864_p7)
}
  0x1f   : > { %s868_s27 = scalar_lea.vmem %s1115_s16, 512  ;;  %p876_p2 = scmp.lt.s32.totalorder %s1115_s16, %s1115_s16 }
  0x20   : > { %p869_p9 = scmp.ne.s32.totalorder %s1115_s16, %s868_s27  ;;  %p877_p12 = scmp.lt.s32.totalorder %s868_s27, %s868_s27 }
  0x22   : > { %p871_p10 = pnand %p869_p9, %p857_p13  ;;  %p878_p0 = por %p877_p12, %p876_p2 }
  0x24   : > { %p872_p1 = pneg %p871_p10 }
  0x26   : > { %p879_p6 = pnand %p878_p0, %p872_p1 }
  0x28   : > { %882 = shalt.err (!%p879_p6)
}
  0x29   : > { %s1015_s28 = smov 128   ;;  %s1016_s11 = smov 8  }
  0x2a   : > { %794 = dma.hbm_to_vmem [thread:$0]  (!%p1122_p11), %s1322_s1, 512, %s1115_s16, [#allocation7], %s1015_s28, %s1015_s28, %s1016_s11  }
  0x2b   : > { %s883_s22 = scalar_lea.hbm %s1324_s3, 1024 }
  0x2c   : > { %p884_p2 = scmp.ne.s32.totalorder %s1324_s3, %s883_s22  ;;  %p890_p10 = scmp.lt.u32.totalorder %s883_s22, %s1324_s3 }
  0x2e   : > { %p886_p1 = pnand %p884_p2, %p857_p13 }
  0x30   : > { %p887_p6 = pneg %p886_p1 }
  0x32   : > { %p892_p3 = pnand %p890_p10, %p887_p6 }
  0x34   : > { %895 = shalt.err (!%p892_p3)
}
  0x35   : > { %s896_s16 = scalar_lea.vmem %s1126_s19, 1024  ;;  %p904_p12 = scmp.lt.s32.totalorder %s1126_s19, %s1126_s19 }
  0x36   : > { %p897_p5 = scmp.ne.s32.totalorder %s1126_s19, %s896_s16  ;;  %p905_p0 = scmp.lt.s32.totalorder %s896_s16, %s896_s16 }
  0x38   : > { %p899_p7 = pnand %p897_p5, %p857_p13  ;;  %p906_p2 = por %p905_p0, %p904_p12 }
  0x3a   : > { %p900_p9 = pneg %p899_p7 }
  0x3c   : > { %p907_p1 = pnand %p906_p2, %p900_p9 }
  0x3e   : > { %910 = shalt.err (!%p907_p1)
}
  0x3f   : > { %797 = dma.hbm_to_vmem [thread:$0]  (!%p1122_p11), %s1324_s3, 1024, %s1126_s19, [#allocation7], %s1015_s28, %s1015_s28, %s1016_s11  }
  0x40   : > { %s1181_s18 = sadd.s32 1, %s1011_s10   ;;  %s34_s17 = sadd.s32 1, %s1007_s9 }
  0x41   : > { %s31_s20 = ssub.s32 %s1011_s10, %s1181_s18  ;;  %p41_p13 = scmp.ne.s32.totalorder %s1007_s9, %s1003_s30 }
  0x42   : > { %p32_p6 = scmp.eq.s32.totalorder %s31_s20, 0  ;;  %p42_p10 = scmp.eq.s32.totalorder %s1011_s10, 0 }
  0x43   : > { %p1337_p3 = scmp.eq.s32.totalorder %s1092_s7, 1  ;;  %p808_p7 = scmp.lt.s32.totalorder %s1011_s10, 2 }
  0x44   : > { %s1197_s22 = scalar_select %p32_p6, %s1007_s9, %s34_s17  }
  0x45   : > { %p1191_p5 = por %p1337_p3, %p41_p13  ;;  %p43_p9 = por %p42_p10, %p41_p13 }
  0x46   : > { %s287_s23 = sand.u32 1, %s1007_s9   ;;  %s700_s19 = sshll.u32 %s1011_s10, 7 }
  0x47   : > { %s1338_s21 = scalar_select %p1191_p5, 1, 0 }
  0x48   : > { %s699_s24 = sshll.u32 %s287_s23, 3  ;;  %s1204_s25 = scalar_lea.hbm %s1321_s0, %s700_s19 }
  0x49   : > { %s291_s26 = scalar_lea.vmem [#allocation3], %s699_s24  ;;  %p1208_p11 = pnand %p808_p7, %p43_p9 }
  0x4a   : > { %s298_s16 = sshll.u32 %s291_s26, 4  ;;  %s288_s15 = scalar_lea.sflag [#allocation4], %s287_s23  ;;  %s1206_s16 = int_to_ptr.vmem [resolvable:$true] %s298_s16 }
  0x4b   : > { %s911_s17 = scalar_lea.hbm %s1204_s25, 128  ;;  %p913_p0 = pneg %p1208_p11 }
  0x4c   : > { %p912_p12 = scmp.ne.s32.totalorder %s1204_s25, %s911_s17  ;;  %s916_s19 = scalar_lea.hbm %s1321_s0, 256 }
  0x4d   : > { %p917_p13 = scmp.lt.u32.totalorder %s1204_s25, %s1321_s0  ;;  %p918_p6 = scmp.lt.u32.totalorder %s916_s19, %s911_s17 }
  0x4e   : > { %p914_p2 = pnand %p913_p0, %p912_p12  ;;  %p920_p3 = scmp.lt.u32.totalorder %s911_s17, %s1204_s25 }
  0x4f   : > { %p919_p10 = por %p918_p6, %p917_p13 }
  0x50   : > { %p915_p1 = pneg %p914_p2 }
  0x51   : > { %p921_p7 = por %p920_p3, %p919_p10 }
  0x53   : > { %p922_p9 = pnand %p921_p7, %p915_p1 }
  0x55   : > { %925 = shalt.err (!%p922_p9)
}
  0x56   : > { %s926_s23 = scalar_lea.vmem %s1206_s16, 128  ;;  %s1017_s26 = smov [#allocation3]  }
  0x57   : > { %p927_p12 = scmp.ne.s32.totalorder %s1206_s16, %s926_s23  ;;  %s931_s20 = sshll.u32 %s1017_s26, 4  ;;  %s932_s20 = int_to_ptr.vmem [resolvable:$false] %s931_s20 }
  0x58   : > { %s933_s24 = scalar_lea.vmem %s932_s20, 256  ;;  %p934_p4 = scmp.lt.s32.totalorder %s1206_s16, %s932_s20 }
  0x59   : > { %p929_p2 = pnand %p927_p12, %p913_p0  ;;  %p935_p13 = scmp.lt.s32.totalorder %s933_s24, %s926_s23 }
  0x5b   : > { %p930_p5 = pneg %p929_p2  ;;  %p936_p6 = por %p935_p13, %p934_p4 }
  0x5d   : > { %p937_p10 = pnand %p936_p6, %p930_p5 }
  0x5f   : > { %940 = shalt.err (!%p937_p10)
}
  0x60   : > { %801 = dma.hbm_to_vmem [thread:$0]  (!%p1208_p11), %s1204_s25, 128, %s1206_s16, %s288_s15  }
  0x61   : > { %314 = sbr.rel (%p1111_p8) target bundleno = 577 (0x241), region = 52  ;;  %s1240_s17 = sand.u32 (!%p1111_p8), 1, %s1003_s30  }
  0x62   : > { %s702_s19 = sshll.u32 (!%p1111_p8), %s1240_s17, 3  ;;  %s317_s28 = scalar_lea.sflag (!%p1111_p8), [#allocation4], %s1240_s17 }
  0x63   : > { %s1246_s11 = scalar_lea.vmem (!%p1111_p8), [#allocation3], %s702_s19  ;;  %p1340_p4 = scmp.ne.s32.totalorder (!%p1111_p8), %s1333_s12, 0 }
  0x68   : > { %986 = dma.done.wait (%p1340_p4), %s317_s28, 128  }
  0x69   : > { %988 = vsyncadd (%p1340_p4), %s317_s28, 4294967168  ;;  %p1341_p5 = scmp.eq.s32.totalorder %s1092_s7, 0 }
  0x6b   : > { %990 = dma.done.wait (%p1341_p5), [#allocation7], 1536   ;;  %p1342_p8 = pmov %p1341_p5 }
  0x6c   : > { %v1018_v1 = vmov 0.0|0.0   ;;  %vm1019_vm0 = vmmov 0   ;;  %v1020_v2 = vmov 0.0   ;;  %p365_p11 = scmp.lt.s32.totalorder %s1092_s7, 1  ;;  %v370_v3 = vld [vmem:[#allocation6] sm:$0xff]  ;;  %v371_v4 = vld [vmem:[#allocation6 + $0x8] sm:$0xff]  ;;  %v568_v38 = vlaneseq }
  0x6d   : > { %992 = vsyncadd (%p1342_p8), [#allocation7], 4294965760  ;;  %761 = vmatprep.subr.bf16.mxu0 %v1018_v1  ;;  %739 = vmatprep.mubr.msk.f32.mxu0 %vm1019_vm0, %v1020_v2  ;;  %v372_v5 = vld [vmem:[#allocation6 + $0x10] sm:$0xff]  ;;  %v762_v6 = vpack.c.bf16 %v371_v4, %v370_v3  ;;  %v373_v7 = vld [vmem:[#allocation6 + $0x18] sm:$0xff]  ;;  %vm381_vm1 = vcmask 261120   ;;  %v1021_v24 = vmov 0  }
  0x6e   : > { %767 = vmatprep.subr.bf16.mxu1 %v1018_v1  ;;  %758 = vmatprep.mubr.msk.f32.mxu1 %vm1019_vm0, %v1020_v2  ;;  %s366_s14 = scalar_select %p365_p11, %s1092_s7, 1  ;;  %v456_v10 = vld [vmem:[#allocation8] sm:$0xff]  ;;  %v457_v11 = vld [vmem:[#allocation8 + $0x8] sm:$0xff]  ;;  %v765_v12 = vpack.c.bf16 %v373_v7, %v372_v5  ;;  %v458_v14 = vld [vmem:[#allocation8 + $0x10] sm:$0xff]  ;;  %vm471_vm2 = vcmask 523264   ;;  %v569_v39 = vand.u32 127, %v568_v38 }
  0x6f   : > { %763 = vmatpush3.bf16.msra.mxu0 %v762_v6  ;;  %v768_v13 = vpack.c.bf16 %v457_v11, %v456_v10  ;;  %v459_v15 = vld [vmem:[#allocation8 + $0x18] sm:$0xff]  ;;  %v460_v17 = vld [vmem:[#allocation8 + $0x20] sm:$0xff]  ;;  %v461_v18 = vld [vmem:[#allocation8 + $0x28] sm:$0xff]  ;;  %852 = vset.pattern.permute.xlu0 %v1021_v24  ;;  %s580_s15 = scalar_lea.sflag [#allocation5], %s1240_s17  ;;  %p1343_p1 = scmp.ne.s32.totalorder %s1338_s21, 0 }
  0x70   : > { %s706_s25 = sshll.u32 %s366_s14, 3  ;;  %764 = vmatprep.subr.bf16.mxu0 %v1018_v1  ;;  %v771_v16 = vpack.c.bf16 %v459_v15, %v458_v14  ;;  %v369_v19 = vld [vmem:[%s1246_s11] sm:$0xff]  ;;  %v774_v20 = vpack.c.bf16 %v461_v18, %v460_v17  ;;  %v712_v25 = vld [vmem:[#allocation2] ss:$0 sm:$0xff]  ;;  %vm570_vm3 = vcmp.eq.s32.totalorder %v569_v39, 16  ;;  %s714_s11 = sshll.u32 %s1092_s7, 7 }
  0x71   : > { %s368_s27 = scalar_lea.vmem %s1327_s6, %s706_s25  ;;  %769 = vmatpush3.bf16.msra.mxu1 %v768_v13  ;;  %v462_v21 = vld [vmem:[#allocation8 + $0x30] sm:$0xff]  ;;  %v463_v22 = vld [vmem:[#allocation8 + $0x38] sm:$0xff]  ;;  %v707_v29 = vld [vmem:[%s1323_s2] ss:$0 sm:$0xff]  ;;  %s364_s14 = scalar_lea.vmem [#allocation9], %s702_s19 }
  0x72   : > { %v546_v8 = vld [vmem:[%s368_s27] sm:$0xff]  ;;  %770 = vmatprep.subr.bf16.mxu1 %v1018_v1  ;;  %v777_v23 = vpack.c.bf16 %v463_v22, %v462_v21  ;;  %s593_s25 = sshll.u32 %s364_s14, 4  ;;  %s1277_s27 = scalar_lea.hbm %s1329_s8, %s714_s11  ;;  %s1279_s25 = int_to_ptr.vmem [resolvable:$true] %s593_s25 }
  0x73   : > { %v556_v9 = vmul.f32 %v546_v8, %v546_v8  ;;  %766 = vmatpush3.bf16.msra.mxu0 %v765_v12  ;;  %v709_v34 = vld [vmem:[%s1325_s4] ss:$0 sm:$0xff]  ;;  %s941_s23 = scalar_lea.vmem %s1279_s25, 128  ;;  %s1022_s7 = smov [#allocation9]  }
  0x74   : > { %v711_v40 = vld [vmem:[%s1326_s5] ss:$0 sm:$0xff]  ;;  %p942_p0 = scmp.ne.s32.totalorder %s1279_s25, %s941_s23  ;;  %s945_s19 = sshll.u32 %s1022_s7, 4  ;;  %s946_s19 = int_to_ptr.vmem [resolvable:$false] %s945_s19 }
  0x75   : > { %557 = vadd.xlane.f32.xlu0 %v556_v9  ;;  %772 = vmatpush3.bf16.msra.mxu1 %v771_v16  ;;  %v554_v41 = vmul.f32 %v711_v40, %v546_v8  ;;  %s947_s26 = scalar_lea.vmem %s946_s19, 256  ;;  %p948_p9 = scmp.lt.s32.totalorder %s1279_s25, %s946_s19 }
  0x76   : > { %740 = vmatmul.mubr.msk.f32.vlgmr.msra.gmra.mrb[0].mxu0 %vm381_vm1, %v369_v19  ;;  %773 = vmatprep.subr.bf16.mxu1 %v1018_v1  ;;  %p943_p3 = pnand %p942_p0, %p1343_p1  ;;  %p949_p12 = scmp.lt.s32.totalorder %s947_s26, %s941_s23 }
  0x78   : > { %p944_p7 = pneg %p943_p3  ;;  %p950_p2 = por %p949_p12, %p948_p9 }
  0x79   : > { %775 = vmatpush3.bf16.msra.mxu1 %v774_v20 }
  0x7a   : > { %776 = vmatprep.subr.bf16.mxu1 %v1018_v1  ;;  %p951_p13 = pnand %p950_p2, %p944_p7 }
  0x7d   : > { %778 = vmatpush3.bf16.msra.mxu1 %v777_v23 }
 0x102   : > { %v558_v26 = vpop.xlane.xlu0 %557 }
 0x103   : > { %v559_v27 = vmul.f32 -0.5, %v558_v26 }
 0x105   : > { %v567_v28 = vsub.f32 %v559_v27, %v712_v25 }
 0x107   : > { %573 = vperm.xlu0 %852, %v567_v28  }
 0x149   : > { %v451_v30 = vpop.f32.mrb[0].mxu0 }
 0x14a   : > { %v452_v31 = vadd.f32 %v707_v29, %v451_v30  ;;  %v741_v32 = vpop.f32.mrb[1].mxu0 }
 0x14c   : > { %v455_v33 = vmax.f32 %v452_v31, 0.0 }
 0x14e   : > { %759 = vmatmul.mubr.msk.f32.vlgmr.msra.gmra.mrb[0].mxu1 %vm471_vm2, %v455_v33 }
 0x186   : > { %v574_v42 = vpop.permute.xlu0 %573 }
 0x187   : > { %v576_v44 = vsel %vm570_vm3, %v574_v42, 0.0 }
 0x221   : > { %v541_v35 = vpop.f32.mrb[0].mxu1 }
 0x222   : > { %v542_v36 = vadd.f32 %v709_v34, %v541_v35  ;;  %v760_v37 = vpop.f32.mrb[1].mxu1 }
 0x224   : > { %853 = vtanh.f32 %v542_v36 }
 0x22e   : > { %v854_v43 = vpop.eup %853 }
 0x22f   : > { %v555_v45 = vadd.f32 %v854_v43, %v554_v41 }
 0x231   : > { %v577_v46 = vadd.f32 %v576_v44, %v555_v45 }
 0x233   : > { %578 = vst [vmem:[%s364_s14] sm:$0xff] %v577_v46 }
 0x234   : > { %954 = shalt.err (!%p951_p13)
}
 0x235   : > { %s955_s17 = scalar_lea.hbm %s1277_s27, 128  ;;  %s959_s28 = scalar_lea.hbm %s1329_s8, 256 }
 0x236   : > { %p956_p6 = scmp.ne.s32.totalorder %s1277_s27, %s955_s17  ;;  %p960_p5 = scmp.lt.u32.totalorder %s1277_s27, %s1329_s8 }
 0x237   : > { %p961_p8 = scmp.lt.u32.totalorder %s959_s28, %s955_s17  ;;  %p963_p0 = scmp.lt.u32.totalorder %s955_s17, %s1277_s27 }
 0x238   : > { %p957_p10 = pnand %p956_p6, %p1343_p1 }
 0x239   : > { %p962_p11 = por %p961_p8, %p960_p5 }
 0x23a   : > { %p958_p4 = pneg %p957_p10 }
 0x23b   : > { %p964_p3 = por %p963_p0, %p962_p11 }
 0x23d   : > { %p965_p7 = pnand %p964_p3, %p958_p4 }
 0x23f   : > { %968 = shalt.err (!%p965_p7)
}
 0x240   : > { %789 = dma.vmem_to_hbm [thread:$0]  (%p1343_p1), %s1279_s25, 128, %s1277_s27, %s580_s15  }
 0x241 PF: > { %s605_s12 = sand.u32 1, %s999_s29   ;;  %p1344_p9 = scmp.ne.s32.totalorder %s1334_s13, 0 }
 0x242   : > { %p1345_p12 = scmp.ge.s32.totalorder %s1011_s10, 2  ;;  %s606_s16 = scalar_lea.sflag [#allocation5], %s605_s12 }
 0x244   : > { %p803_p2 = pnand %p1345_p12, %p1344_p9 }
 0x246   : > { %994 = dma.done.wait (!%p803_p2), %s606_s16, 128  }
 0x247   : > { %996 = vsyncadd (!%p803_p2), %s606_s16, 4294967168  ;;  %p24_p13 = scmp.ge.s32.totalorder %s1181_s18, 4   ;;  %s1346_s29 = smov %s1003_s30 }
 0x248   : > { %s1347_s30 = smov %s1007_s9  ;;  %s1348_s9 = smov %s1197_s22 }
 0x249   : > { %s1349_s10 = smov %s1181_s18  ;;  %26 = sbr.rel (!%p24_p13) target bundleno = 9 (0x9), region = 108 }
 0x250   :  { %611 = vsyncpa [#allocation4], 1 }
 0x251   :  { %613 = vsyncpa [#allocation4 + $0x1], 1 }
 0x252   :  { %614 = vsyncpa [#allocation7], 1 }
 0x253   :  { %615 = vsyncpa [#allocation5], 1 }
 0x254   :  { %617 = vsyncpa [#allocation5 + $0x1], 1 }

</bundles_post_ra>
